<compile_context>
chip_gen: v7x
topology: tpu7x:2x2x1
jax: 0.10.0
libtpu: 0.0.40
codegen_flags: <defaults>
</compile_context>

<pallas_src>
import functools
import math

import numpy as np
import jax
import jax.numpy as jnp
from jax.experimental import pallas as pl
from jax.experimental.pallas import tpu as pltpu

LEAKY_SLOPE = 0.2
EPS = 1e-5                      # torch.nn.InstanceNorm2d default eps
INV_SQRT2 = 1.0 / math.sqrt(2.0)


# ----------------------------- in-kernel helpers -----------------------------
def _leaky(v):
    return jnp.where(v > 0, v, LEAKY_SLOPE * v)


def _instance_norm(x, gamma, beta):
    # x: (C, P) per-sample lane-dense; gamma/beta: (C, 1).  Pure lane
    # reductions (XLU) + EUP rsqrt, all in f32.
    mean = jnp.mean(x, axis=-1, keepdims=True)
    d = x - mean
    var = jnp.mean(d * d, axis=-1, keepdims=True)
    scale = gamma * jax.lax.rsqrt(var + EPS)
    return d * scale + beta


def _conv3x3(x, wmat, bias, masks, h, w):
    # x: (Cin_pad, P=h*w) f32; wmat: (Cout_pad, 9*Cin_pad) tap-major, already
    # in MXU dtype; bias: (Cout_pad, 1) f32; masks: (8, P) f32 border masks in
    # tap order (center tap excluded).
    c, p = x.shape
    taps = []
    t = 0
    for dy in (-1, 0, 1):
        for dx in (-1, 0, 1):
            off = dy * w + dx
            if off == 0:
                taps.append(x)
                continue
            # shifted[:, q] = x[:, q + off]  (XLU rotate); border masked.
            shifted = pltpu.roll(x, (-off) % p, 1)
            taps.append(shifted * masks[t:t + 1, :])
            t += 1
    stack = jnp.concatenate(taps, axis=0).astype(wmat.dtype)   # (9*Cin_pad, P)
    out = jnp.dot(wmat, stack, preferred_element_type=jnp.float32)
    return out + bias


# --------------------------------- kernel ------------------------------------
def resblk_kernel(*refs, h, w, normalize, downsample, learned_sc):
    it = iter(refs)
    x_ref = next(it)
    w1_ref = next(it)
    b1_ref = next(it)
    w2_ref = next(it)
    b2_ref = next(it)
    wsc_ref = next(it) if learned_sc else None
    if normalize:
        g1_ref = next(it)
        be1_ref = next(it)
        g2_ref = next(it)
        be2_ref = next(it)
    pool_ref = next(it) if downsample else None
    m1_ref = next(it)
    m2_ref = next(it) if downsample else m1_ref
    o_ref = next(it)

    x = x_ref[...]                                   # (Ci_pad, H*W) f32

    # ---------------- shortcut: pool FIRST (4x fewer lanes), then 1x1 --------
    sc = x
    if downsample:
        pool = pool_ref[...]
        sc = jnp.dot(sc.astype(pool.dtype), pool,
                     preferred_element_type=jnp.float32)
    if learned_sc:
        wsc = wsc_ref[...]
        sc = jnp.dot(wsc, sc.astype(wsc.dtype),
                     preferred_element_type=jnp.float32)

    # ------------------------------ residual ---------------------------------
    r = x
    if normalize:
        r = _instance_norm(r, g1_ref[...], be1_ref[...])
    r = _leaky(r)
    r = _conv3x3(r, w1_ref[...], b1_ref[...], m1_ref[...], h, w)
    if downsample:
        pool = pool_ref[...]
        r = jnp.dot(r.astype(pool.dtype), pool,
                    preferred_element_type=jnp.float32)
        h2, w2 = h // 2, w // 2
    else:
        h2, w2 = h, w
    if normalize:
        r = _instance_norm(r, g2_ref[...], be2_ref[...])
    r = _leaky(r)
    r = _conv3x3(r, w2_ref[...], b2_ref[...], m2_ref[...], h2, w2)

    # single in-kernel VPU multiply for 1/sqrt(2); residual add stays in f32.
    o_ref[...] = ((sc + r) * INV_SQRT2).astype(o_ref.dtype)


# -------------------------- host-side constant builders -----------------------
def _round_up(v, m):
    return (v + m - 1) // m * m


def _pool_matrix(h, w):
    # per-sample avg_pool2d(2) as a (H*W, Ho*Wo) matmul (loaded once).
    ho, wo = h // 2, w // 2
    m = np.zeros((h * w, ho * wo), np.float32)
    for i in range(h):
        for j in range(w):
            m[i * w + j, (i // 2) * wo + (j // 2)] = 0.25
    return m


def _border_masks(h, w):
    # (8, H*W) f32, tap order (-1,-1),(-1,0),(-1,1),(0,-1),(0,1),(1,-1),(1,0),(1,1)
    i = np.repeat(np.arange(h), w)
    j = np.tile(np.arange(w), h)
    rows = []
    for dy in (-1, 0, 1):
        for dx in (-1, 0, 1):
            if dy == 0 and dx == 0:
                continue
            valid = ((i + dy >= 0) & (i + dy < h) &
                     (j + dx >= 0) & (j + dx < w))
            rows.append(valid.astype(np.float32))
    return jnp.asarray(np.stack(rows, axis=0))


# -------------------------------- wrapper -------------------------------------
def resblk_forward(x_nchw, params, *, normalize=True, downsample=True,
                   mxu_dtype=jnp.bfloat16):
    n, ci, h, w = x_nchw.shape
    co = params["w2"].shape[0]
    learned_sc = ci != co
    if downsample:
        assert h % 2 == 0 and w % 2 == 0, "avg_pool2d(2) needs even H, W"
    ho, wo = (h // 2, w // 2) if downsample else (h, w)
    f32 = jnp.float32
    ci_p = _round_up(ci, 8)
    co_p = _round_up(co, 8)
    hw, how = h * w, ho * wo

    # ---- layout plumbing: (N, C_pad, H*W) — channels->sublanes, spatial->lanes
    x_flat = x_nchw.reshape(n, ci, hw).astype(f32)
    x_flat = jnp.pad(x_flat, ((0, 0), (0, ci_p - ci), (0, 0)))

    def conv_weight(wgt, out_p):
        o = wgt.shape[0]
        m = jnp.transpose(wgt, (0, 2, 3, 1))                       # (O,3,3,I)
        m = jnp.pad(m, ((0, out_p - o), (0, 0), (0, 0), (0, ci_p - ci)))
        return m.reshape(out_p, 9 * ci_p).astype(mxu_dtype)

    w1m = conv_weight(params["w1"], ci_p)
    w2m = conv_weight(params["w2"], co_p)
    b1c = jnp.pad(params["b1"].astype(f32), (0, ci_p - ci)).reshape(ci_p, 1)
    b2c = jnp.pad(params["b2"].astype(f32), (0, co_p - co)).reshape(co_p, 1)

    def const_spec(a):
        nd = a.ndim
        return pl.BlockSpec(a.shape, lambda b, _nd=nd: (0,) * _nd)

    inputs = [x_flat, w1m, b1c, w2m, b2c]
    in_specs = [pl.BlockSpec((pl.Squeezed(), ci_p, hw), lambda b: (b, 0, 0)),
                const_spec(w1m), const_spec(b1c),
                const_spec(w2m), const_spec(b2c)]

    if learned_sc:
        wsc = params["wsc"].reshape(co, ci).astype(f32)
        wsc = jnp.pad(wsc, ((0, co_p - co), (0, ci_p - ci))).astype(mxu_dtype)
        inputs.append(wsc)
        in_specs.append(const_spec(wsc))
    if normalize:
        def affine(v, pad_val):
            return jnp.pad(v.astype(f32), (0, ci_p - ci),
                           constant_values=pad_val).reshape(ci_p, 1)
        for name, pv in (("g1", 1.0), ("be1", 0.0), ("g2", 1.0), ("be2", 0.0)):
            a = affine(params[name], pv)
            inputs.append(a)
            in_specs.append(const_spec(a))
    if downsample:
        pool = jnp.asarray(_pool_matrix(h, w)).astype(mxu_dtype)
        inputs.append(pool)
        in_specs.append(const_spec(pool))
    m1 = _border_masks(h, w)
    inputs.append(m1)
    in_specs.append(const_spec(m1))
    if downsample:
        m2 = _border_masks(ho, wo)
        inputs.append(m2)
        in_specs.append(const_spec(m2))

    # ---- advisory cost estimate (whole call) ---------------------------------
    flops_per = 2 * ci_p * (9 * ci_p) * hw + 2 * co_p * (9 * ci_p) * how
    if downsample:
        flops_per += 2 * 2 * ci_p * hw * how          # residual + shortcut pool
    if learned_sc:
        flops_per += 2 * co_p * ci_p * how
    bytes_accessed = (sum(int(a.size) * a.dtype.itemsize for a in inputs)
                      + n * co_p * how * 4)
    cost = pl.CostEstimate(flops=n * flops_per,
                           transcendentals=(n * 2 * ci_p if normalize else 0),
                           bytes_accessed=bytes_accessed)

    kern = functools.partial(resblk_kernel, h=h, w=w, normalize=normalize,
                             downsample=downsample, learned_sc=learned_sc)

    out = pl.pallas_call(
        kern,
        out_shape=jax.ShapeDtypeStruct((n, co_p, how), f32),
        grid=(n,),                                    # one sample per step
        in_specs=in_specs,
        out_specs=pl.BlockSpec((pl.Squeezed(), co_p, how),
                               lambda b: (b, 0, 0)),
        compiler_params=pltpu.CompilerParams(
            dimension_semantics=("parallel",),        # megacore on v7x
            vmem_limit_bytes=32 * 1024 * 1024),
        cost_estimate=cost,
    )(*inputs)
    # TODO(synk): at real StarGAN sizes (256x256, C>=128) add a second grid axis
    # of row-band spatial tiles (1-row halo for the 3x3 taps) sized from
    # pltpu.get_tpu_info().vmem_capacity_bytes.

    return out[:, :co, :].reshape(n, co, ho, wo)      # back to NCHW


# --------------------------- pure-JAX reference --------------------------------
def ref_forward(x, p, *, normalize=True, downsample=True):
    def conv(v, wgt, b=None):
        out = jax.lax.conv_general_dilated(
            v, wgt, window_strides=(1, 1), padding="SAME",
            dimension_numbers=("NCHW", "OIHW", "NCHW"))
        if b is not None:
            out = out + b.reshape(1, -1, 1, 1)
        return out

    def inorm(v, g, bb):
        mu = jnp.mean(v, axis=(2, 3), keepdims=True)
        var = jnp.mean((v - mu) ** 2, axis=(2, 3), keepdims=True)
        return ((v - mu) / jnp.sqrt(var + EPS)) * g.reshape(1, -1, 1, 1) \
            + bb.reshape(1, -1, 1, 1)

    def pool(v):
        n, c, h, w = v.shape
        return v.reshape(n, c, h // 2, 2, w // 2, 2).mean(axis=(3, 5))

    leaky = lambda v: jnp.where(v > 0, v, LEAKY_SLOPE * v)

    ci = x.shape[1]
    co = p["w2"].shape[0]
    sc = x
    if ci != co:
        sc = conv(x, p["wsc"])
    if downsample:
        sc = pool(sc)
    r = x
    if normalize:
        r = inorm(r, p["g1"], p["be1"])
    r = leaky(r)
    r = conv(r, p["w1"], p["b1"])
    if downsample:
        r = pool(r)
    if normalize:
        r = inorm(r, p["g2"], p["be2"])
    r = leaky(r)
    r = conv(r, p["w2"], p["b2"])
    return (sc + r) / math.sqrt(2.0)


# ---------------------------------- main ---------------------------------------
if __name__ == "__main__":
    N, Ci, H, W = 2, 4, 16, 16
    Co = 8                              # dim_in != dim_out -> learned 1x1 shortcut
    f32 = jnp.float32

    key = jax.random.PRNGKey(0)
    ks = jax.random.split(key, 12)
    params = dict(
        w1=jax.random.normal(ks[0], (Ci, Ci, 3, 3), f32) * 0.1,   # conv1 (OIHW)
        b1=jax.random.normal(ks[1], (Ci,), f32) * 0.1,
        w2=jax.random.normal(ks[2], (Co, Ci, 3, 3), f32) * 0.1,   # conv2 (OIHW)
        b2=jax.random.normal(ks[3], (Co,), f32) * 0.1,
        wsc=jax.random.normal(ks[4], (Co, Ci, 1, 1), f32) * 0.1,  # conv1x1, no bias
        g1=1.0 + jax.random.normal(ks[5], (Ci,), f32) * 0.1,      # norm1 affine
        be1=jax.random.normal(ks[6], (Ci,), f32) * 0.1,
        g2=1.0 + jax.random.normal(ks[7], (Ci,), f32) * 0.1,      # norm2 affine
        be2=jax.random.normal(ks[8], (Ci,), f32) * 0.1,
    )
    x = jax.random.normal(ks[9], (N, Ci, H, W), f32)              # NCHW

    # --- config A: normalize + downsample + learned shortcut -----------------
    ref = ref_forward(x, params, normalize=True, downsample=True)

    # exact-semantics path (f32 at the MXU): tight tolerance
    out_f32 = resblk_forward(x, params, normalize=True, downsample=True,
                             mxu_dtype=jnp.float32)
    out_f32 = jax.block_until_ready(out_f32)
    assert out_f32.shape == (N, Co, H // 2, W // 2)
    np.testing.assert_allclose(np.asarray(out_f32), np.asarray(ref),
                               rtol=1e-4, atol=1e-4)

    # perf path (bf16 at the MXU, f32 stats/elementwise): bf16 tolerance
    out_bf16 = resblk_forward(x, params, normalize=True, downsample=True,
                              mxu_dtype=jnp.bfloat16)
    out_bf16 = jax.block_until_ready(out_bf16)
    np.testing.assert_allclose(np.asarray(out_bf16), np.asarray(ref),
                               rtol=5e-2, atol=5e-2)

    # --- config B: plain block (no norm, no pool, identity shortcut) ----------
    params_b = dict(
        w1=params["w1"], b1=params["b1"],
        w2=jax.random.normal(ks[10], (Ci, Ci, 3, 3), f32) * 0.1,
        b2=jax.random.normal(ks[11], (Ci,), f32) * 0.1,
    )
    ref_b = ref_forward(x, params_b, normalize=False, downsample=False)
    out_b = resblk_forward(x, params_b, normalize=False, downsample=False,
                           mxu_dtype=jnp.float32)
    out_b = jax.block_until_ready(out_b)
    assert out_b.shape == (N, Ci, H, W)
    np.testing.assert_allclose(np.asarray(out_b), np.asarray(ref_b),
                               rtol=1e-4, atol=1e-4)

    print("KERNEL_OK")
</pallas_src>

<mosaic_0001>
module attributes {stable_mosaic.version = 11 : i64} {
  func.func @resblk_kernel(%arg0: i32, %arg1: memref<1x8x256xf32, #tpu.memory_space<vmem>>, %arg2: memref<8x72xf32, #tpu.memory_space<vmem>>, %arg3: memref<8x1xf32, #tpu.memory_space<vmem>>, %arg4: memref<8x72xf32, #tpu.memory_space<vmem>>, %arg5: memref<8x1xf32, #tpu.memory_space<vmem>>, %arg6: memref<8x8xf32, #tpu.memory_space<vmem>>, %arg7: memref<8x1xf32, #tpu.memory_space<vmem>>, %arg8: memref<8x1xf32, #tpu.memory_space<vmem>>, %arg9: memref<8x1xf32, #tpu.memory_space<vmem>>, %arg10: memref<8x1xf32, #tpu.memory_space<vmem>>, %arg11: memref<256x64xf32, #tpu.memory_space<vmem>>, %arg12: memref<8x256xf32, #tpu.memory_space<vmem>>, %arg13: memref<8x64xf32, #tpu.memory_space<vmem>>, %arg14: memref<1x8x64xf32, #tpu.memory_space<vmem>>) attributes {dimension_semantics = [#tpu.dimension_semantics<parallel>], iteration_bounds = array<i64: 2>, scalar_prefetch = 0 : i64, scratch_operands = 0 : i64, tpu.core_type = #tpu.core_type<tc>, window_params = [{transform_indices = @transform_0, window_bounds = array<i64: 1, 8, 256>}, {pipeline_mode = #tpu.pipeline_mode<synchronous>, transform_indices = @transform_1, window_bounds = array<i64: 8, 72>}, {pipeline_mode = #tpu.pipeline_mode<synchronous>, transform_indices = @transform_2, window_bounds = array<i64: 8, 1>}, {pipeline_mode = #tpu.pipeline_mode<synchronous>, transform_indices = @transform_3, window_bounds = array<i64: 8, 72>}, {pipeline_mode = #tpu.pipeline_mode<synchronous>, transform_indices = @transform_4, window_bounds = array<i64: 8, 1>}, {pipeline_mode = #tpu.pipeline_mode<synchronous>, transform_indices = @transform_5, window_bounds = array<i64: 8, 8>}, {pipeline_mode = #tpu.pipeline_mode<synchronous>, transform_indices = @transform_6, window_bounds = array<i64: 8, 1>}, {pipeline_mode = #tpu.pipeline_mode<synchronous>, transform_indices = @transform_7, window_bounds = array<i64: 8, 1>}, {pipeline_mode = #tpu.pipeline_mode<synchronous>, transform_indices = @transform_8, window_bounds = array<i64: 8, 1>}, {pipeline_mode = #tpu.pipeline_mode<synchronous>, transform_indices = @transform_9, window_bounds = array<i64: 8, 1>}, {pipeline_mode = #tpu.pipeline_mode<synchronous>, transform_indices = @transform_10, window_bounds = array<i64: 256, 64>}, {pipeline_mode = #tpu.pipeline_mode<synchronous>, transform_indices = @transform_11, window_bounds = array<i64: 8, 256>}, {pipeline_mode = #tpu.pipeline_mode<synchronous>, transform_indices = @transform_12, window_bounds = array<i64: 8, 64>}, {transform_indices = @transform_13, window_bounds = array<i64: 1, 8, 64>}]} {
    %c0 = arith.constant 0 : index
    %c0_0 = arith.constant 0 : index
    %c0_1 = arith.constant 0 : index
    %0 = vector.load %arg1[%c0, %c0_0, %c0_1] : memref<1x8x256xf32, #tpu.memory_space<vmem>>, vector<1x8x256xf32>
    %1 = vector.shape_cast %0 : vector<1x8x256xf32> to vector<8x256xf32>
    %c0_2 = arith.constant 0 : index
    %c0_3 = arith.constant 0 : index
    %2 = vector.load %arg11[%c0_2, %c0_3] : memref<256x64xf32, #tpu.memory_space<vmem>>, vector<256x64xf32>
    %cst = arith.constant dense<0.000000e+00> : vector<8x64xf32>
    %3 = tpu.matmul %1, %2, %cst {dimension_numbers = #tpu.dot_dimension_numbers<[1], [0], [0], [1], [0, 0, 1, 1], [], []>} : vector<8x256xf32>, vector<256x64xf32>, vector<8x64xf32> -> vector<8x64xf32>
    %c0_4 = arith.constant 0 : index
    %c0_5 = arith.constant 0 : index
    %4 = vector.load %arg6[%c0_4, %c0_5] : memref<8x8xf32, #tpu.memory_space<vmem>>, vector<8x8xf32>
    %cst_6 = arith.constant dense<0.000000e+00> : vector<8x64xf32>
    %5 = tpu.matmul %4, %3, %cst_6 {dimension_numbers = #tpu.dot_dimension_numbers<[1], [0], [0], [1], [0, 0, 1, 1], [], []>} : vector<8x8xf32>, vector<8x64xf32>, vector<8x64xf32> -> vector<8x64xf32>
    %c0_7 = arith.constant 0 : index
    %c0_8 = arith.constant 0 : index
    %6 = vector.load %arg7[%c0_7, %c0_8] : memref<8x1xf32, #tpu.memory_space<vmem>>, vector<8x1xf32>
    %c0_9 = arith.constant 0 : index
    %c0_10 = arith.constant 0 : index
    %7 = vector.load %arg8[%c0_9, %c0_10] : memref<8x1xf32, #tpu.memory_space<vmem>>, vector<8x1xf32>
    %cst_11 = arith.constant dense<0.000000e+00> : vector<8xf32>
    %8 = vector.multi_reduction <add>, %1, %cst_11 [1] : vector<8x256xf32> to vector<8xf32>
    %9 = vector.shape_cast %8 : vector<8xf32> to vector<8x1xf32>
    %cst_12 = arith.constant 2.560000e+02 : f32
    %10 = vector.broadcast %cst_12 : f32 to vector<8x1xf32>
    %11 = arith.divf %9, %10 : vector<8x1xf32>
    %12 = vector.broadcast %11 : vector<8x1xf32> to vector<8x256xf32>
    %13 = arith.subf %1, %12 : vector<8x256xf32>
    %14 = arith.mulf %13, %13 : vector<8x256xf32>
    %cst_13 = arith.constant dense<0.000000e+00> : vector<8xf32>
    %15 = vector.multi_reduction <add>, %14, %cst_13 [1] : vector<8x256xf32> to vector<8xf32>
    %16 = vector.shape_cast %15 : vector<8xf32> to vector<8x1xf32>
    %cst_14 = arith.constant 2.560000e+02 : f32
    %17 = vector.broadcast %cst_14 : f32 to vector<8x1xf32>
    %18 = arith.divf %16, %17 : vector<8x1xf32>
    %cst_15 = arith.constant 9.99999974E-6 : f32
    %19 = vector.broadcast %cst_15 : f32 to vector<8x1xf32>
    %20 = arith.addf %18, %19 : vector<8x1xf32>
    %21 = math.rsqrt %20 : vector<8x1xf32>
    %22 = arith.mulf %6, %21 : vector<8x1xf32>
    %23 = vector.broadcast %22 : vector<8x1xf32> to vector<8x256xf32>
    %24 = arith.mulf %13, %23 : vector<8x256xf32>
    %25 = vector.broadcast %7 : vector<8x1xf32> to vector<8x256xf32>
    %26 = arith.addf %24, %25 : vector<8x256xf32>
    %cst_16 = arith.constant 0.000000e+00 : f32
    %27 = vector.broadcast %cst_16 : f32 to vector<8x256xf32>
    %28 = arith.cmpf ogt, %26, %27 : vector<8x256xf32>
    %cst_17 = arith.constant 2.000000e-01 : f32
    %29 = vector.broadcast %cst_17 : f32 to vector<8x256xf32>
    %30 = arith.mulf %29, %26 : vector<8x256xf32>
    %31 = arith.select %28, %26, %30 : vector<8x256xi1>, vector<8x256xf32>
    %c0_18 = arith.constant 0 : index
    %c0_19 = arith.constant 0 : index
    %32 = vector.load %arg2[%c0_18, %c0_19] : memref<8x72xf32, #tpu.memory_space<vmem>>, vector<8x72xf32>
    %c0_20 = arith.constant 0 : index
    %c0_21 = arith.constant 0 : index
    %33 = vector.load %arg3[%c0_20, %c0_21] : memref<8x1xf32, #tpu.memory_space<vmem>>, vector<8x1xf32>
    %c0_22 = arith.constant 0 : index
    %c0_23 = arith.constant 0 : index
    %34 = vector.load %arg12[%c0_22, %c0_23] : memref<8x256xf32, #tpu.memory_space<vmem>>, vector<8x256xf32>
    %c17_i32 = arith.constant 17 : i32
    %35 = tpu.dynamic_rotate %31 by %c17_i32 dim 1 : vector<8x256xf32>, i32 -> vector<8x256xf32>
    %36 = vector.extract_strided_slice %34 {offsets = [0, 0], sizes = [1, 256], strides = [1, 1]} : vector<8x256xf32> to vector<1x256xf32>
    %37 = vector.broadcast %36 : vector<1x256xf32> to vector<8x256xf32>
    %38 = arith.mulf %35, %37 : vector<8x256xf32>
    %c16_i32 = arith.constant 16 : i32
    %39 = tpu.dynamic_rotate %31 by %c16_i32 dim 1 : vector<8x256xf32>, i32 -> vector<8x256xf32>
    %40 = vector.extract_strided_slice %34 {offsets = [1, 0], sizes = [1, 256], strides = [1, 1]} : vector<8x256xf32> to vector<1x256xf32>
    %41 = vector.broadcast %40 : vector<1x256xf32> to vector<8x256xf32>
    %42 = arith.mulf %39, %41 : vector<8x256xf32>
    %c15_i32 = arith.constant 15 : i32
    %43 = tpu.dynamic_rotate %31 by %c15_i32 dim 1 : vector<8x256xf32>, i32 -> vector<8x256xf32>
    %44 = vector.extract_strided_slice %34 {offsets = [2, 0], sizes = [1, 256], strides = [1, 1]} : vector<8x256xf32> to vector<1x256xf32>
    %45 = vector.broadcast %44 : vector<1x256xf32> to vector<8x256xf32>
    %46 = arith.mulf %43, %45 : vector<8x256xf32>
    %c1_i32 = arith.constant 1 : i32
    %47 = tpu.dynamic_rotate %31 by %c1_i32 dim 1 : vector<8x256xf32>, i32 -> vector<8x256xf32>
    %48 = vector.extract_strided_slice %34 {offsets = [3, 0], sizes = [1, 256], strides = [1, 1]} : vector<8x256xf32> to vector<1x256xf32>
    %49 = vector.broadcast %48 : vector<1x256xf32> to vector<8x256xf32>
    %50 = arith.mulf %47, %49 : vector<8x256xf32>
    %c255_i32 = arith.constant 255 : i32
    %51 = tpu.dynamic_rotate %31 by %c255_i32 dim 1 : vector<8x256xf32>, i32 -> vector<8x256xf32>
    %52 = vector.extract_strided_slice %34 {offsets = [4, 0], sizes = [1, 256], strides = [1, 1]} : vector<8x256xf32> to vector<1x256xf32>
    %53 = vector.broadcast %52 : vector<1x256xf32> to vector<8x256xf32>
    %54 = arith.mulf %51, %53 : vector<8x256xf32>
    %c241_i32 = arith.constant 241 : i32
    %55 = tpu.dynamic_rotate %31 by %c241_i32 dim 1 : vector<8x256xf32>, i32 -> vector<8x256xf32>
    %56 = vector.extract_strided_slice %34 {offsets = [5, 0], sizes = [1, 256], strides = [1, 1]} : vector<8x256xf32> to vector<1x256xf32>
    %57 = vector.broadcast %56 : vector<1x256xf32> to vector<8x256xf32>
    %58 = arith.mulf %55, %57 : vector<8x256xf32>
    %c240_i32 = arith.constant 240 : i32
    %59 = tpu.dynamic_rotate %31 by %c240_i32 dim 1 : vector<8x256xf32>, i32 -> vector<8x256xf32>
    %60 = vector.extract_strided_slice %34 {offsets = [6, 0], sizes = [1, 256], strides = [1, 1]} : vector<8x256xf32> to vector<1x256xf32>
    %61 = vector.broadcast %60 : vector<1x256xf32> to vector<8x256xf32>
    %62 = arith.mulf %59, %61 : vector<8x256xf32>
    %c239_i32 = arith.constant 239 : i32
    %63 = tpu.dynamic_rotate %31 by %c239_i32 dim 1 : vector<8x256xf32>, i32 -> vector<8x256xf32>
    %64 = vector.extract_strided_slice %34 {offsets = [7, 0], sizes = [1, 256], strides = [1, 1]} : vector<8x256xf32> to vector<1x256xf32>
    %65 = vector.broadcast %64 : vector<1x256xf32> to vector<8x256xf32>
    %66 = arith.mulf %63, %65 : vector<8x256xf32>
    %67 = tpu.concatenate %38, %42, %46, %50, %31, %54, %58, %62, %66 in 0 : vector<8x256xf32>, vector<8x256xf32>, vector<8x256xf32>, vector<8x256xf32>, vector<8x256xf32>, vector<8x256xf32>, vector<8x256xf32>, vector<8x256xf32>, vector<8x256xf32> -> vector<72x256xf32>
    %cst_24 = arith.constant dense<0.000000e+00> : vector<8x256xf32>
    %68 = tpu.matmul %32, %67, %cst_24 {dimension_numbers = #tpu.dot_dimension_numbers<[1], [0], [0], [1], [0, 0, 1, 1], [], []>} : vector<8x72xf32>, vector<72x256xf32>, vector<8x256xf32> -> vector<8x256xf32>
    %69 = vector.broadcast %33 : vector<8x1xf32> to vector<8x256xf32>
    %70 = arith.addf %68, %69 : vector<8x256xf32>
    %c0_25 = arith.constant 0 : index
    %c0_26 = arith.constant 0 : index
    %71 = vector.load %arg11[%c0_25, %c0_26] : memref<256x64xf32, #tpu.memory_space<vmem>>, vector<256x64xf32>
    %cst_27 = arith.constant dense<0.000000e+00> : vector<8x64xf32>
    %72 = tpu.matmul %70, %71, %cst_27 {dimension_numbers = #tpu.dot_dimension_numbers<[1], [0], [0], [1], [0, 0, 1, 1], [], []>} : vector<8x256xf32>, vector<256x64xf32>, vector<8x64xf32> -> vector<8x64xf32>
    %c0_28 = arith.constant 0 : index
    %c0_29 = arith.constant 0 : index
    %73 = vector.load %arg9[%c0_28, %c0_29] : memref<8x1xf32, #tpu.memory_space<vmem>>, vector<8x1xf32>
    %c0_30 = arith.constant 0 : index
    %c0_31 = arith.constant 0 : index
    %74 = vector.load %arg10[%c0_30, %c0_31] : memref<8x1xf32, #tpu.memory_space<vmem>>, vector<8x1xf32>
    %cst_32 = arith.constant dense<0.000000e+00> : vector<8xf32>
    %75 = vector.multi_reduction <add>, %72, %cst_32 [1] : vector<8x64xf32> to vector<8xf32>
    %76 = vector.shape_cast %75 : vector<8xf32> to vector<8x1xf32>
    %cst_33 = arith.constant 6.400000e+01 : f32
    %77 = vector.broadcast %cst_33 : f32 to vector<8x1xf32>
    %78 = arith.divf %76, %77 : vector<8x1xf32>
    %79 = vector.broadcast %78 : vector<8x1xf32> to vector<8x64xf32>
    %80 = arith.subf %72, %79 : vector<8x64xf32>
    %81 = arith.mulf %80, %80 : vector<8x64xf32>
    %cst_34 = arith.constant dense<0.000000e+00> : vector<8xf32>
    %82 = vector.multi_reduction <add>, %81, %cst_34 [1] : vector<8x64xf32> to vector<8xf32>
    %83 = vector.shape_cast %82 : vector<8xf32> to vector<8x1xf32>
    %cst_35 = arith.constant 6.400000e+01 : f32
    %84 = vector.broadcast %cst_35 : f32 to vector<8x1xf32>
    %85 = arith.divf %83, %84 : vector<8x1xf32>
    %cst_36 = arith.constant 9.99999974E-6 : f32
    %86 = vector.broadcast %cst_36 : f32 to vector<8x1xf32>
    %87 = arith.addf %85, %86 : vector<8x1xf32>
    %88 = math.rsqrt %87 : vector<8x1xf32>
    %89 = arith.mulf %73, %88 : vector<8x1xf32>
    %90 = vector.broadcast %89 : vector<8x1xf32> to vector<8x64xf32>
    %91 = arith.mulf %80, %90 : vector<8x64xf32>
    %92 = vector.broadcast %74 : vector<8x1xf32> to vector<8x64xf32>
    %93 = arith.addf %91, %92 : vector<8x64xf32>
    %cst_37 = arith.constant 0.000000e+00 : f32
    %94 = vector.broadcast %cst_37 : f32 to vector<8x64xf32>
    %95 = arith.cmpf ogt, %93, %94 : vector<8x64xf32>
    %cst_38 = arith.constant 2.000000e-01 : f32
    %96 = vector.broadcast %cst_38 : f32 to vector<8x64xf32>
    %97 = arith.mulf %96, %93 : vector<8x64xf32>
    %98 = arith.select %95, %93, %97 : vector<8x64xi1>, vector<8x64xf32>
    %c0_39 = arith.constant 0 : index
    %c0_40 = arith.constant 0 : index
    %99 = vector.load %arg4[%c0_39, %c0_40] : memref<8x72xf32, #tpu.memory_space<vmem>>, vector<8x72xf32>
    %c0_41 = arith.constant 0 : index
    %c0_42 = arith.constant 0 : index
    %100 = vector.load %arg5[%c0_41, %c0_42] : memref<8x1xf32, #tpu.memory_space<vmem>>, vector<8x1xf32>
    %c0_43 = arith.constant 0 : index
    %c0_44 = arith.constant 0 : index
    %101 = vector.load %arg13[%c0_43, %c0_44] : memref<8x64xf32, #tpu.memory_space<vmem>>, vector<8x64xf32>
    %c9_i32 = arith.constant 9 : i32
    %102 = tpu.dynamic_rotate %98 by %c9_i32 dim 1 : vector<8x64xf32>, i32 -> vector<8x64xf32>
    %103 = vector.extract_strided_slice %101 {offsets = [0, 0], sizes = [1, 64], strides = [1, 1]} : vector<8x64xf32> to vector<1x64xf32>
    %104 = vector.broadcast %103 : vector<1x64xf32> to vector<8x64xf32>
    %105 = arith.mulf %102, %104 : vector<8x64xf32>
    %c8_i32 = arith.constant 8 : i32
    %106 = tpu.dynamic_rotate %98 by %c8_i32 dim 1 : vector<8x64xf32>, i32 -> vector<8x64xf32>
    %107 = vector.extract_strided_slice %101 {offsets = [1, 0], sizes = [1, 64], strides = [1, 1]} : vector<8x64xf32> to vector<1x64xf32>
    %108 = vector.broadcast %107 : vector<1x64xf32> to vector<8x64xf32>
    %109 = arith.mulf %106, %108 : vector<8x64xf32>
    %c7_i32 = arith.constant 7 : i32
    %110 = tpu.dynamic_rotate %98 by %c7_i32 dim 1 : vector<8x64xf32>, i32 -> vector<8x64xf32>
    %111 = vector.extract_strided_slice %101 {offsets = [2, 0], sizes = [1, 64], strides = [1, 1]} : vector<8x64xf32> to vector<1x64xf32>
    %112 = vector.broadcast %111 : vector<1x64xf32> to vector<8x64xf32>
    %113 = arith.mulf %110, %112 : vector<8x64xf32>
    %c1_i32_45 = arith.constant 1 : i32
    %114 = tpu.dynamic_rotate %98 by %c1_i32_45 dim 1 : vector<8x64xf32>, i32 -> vector<8x64xf32>
    %115 = vector.extract_strided_slice %101 {offsets = [3, 0], sizes = [1, 64], strides = [1, 1]} : vector<8x64xf32> to vector<1x64xf32>
    %116 = vector.broadcast %115 : vector<1x64xf32> to vector<8x64xf32>
    %117 = arith.mulf %114, %116 : vector<8x64xf32>
    %c63_i32 = arith.constant 63 : i32
    %118 = tpu.dynamic_rotate %98 by %c63_i32 dim 1 : vector<8x64xf32>, i32 -> vector<8x64xf32>
    %119 = vector.extract_strided_slice %101 {offsets = [4, 0], sizes = [1, 64], strides = [1, 1]} : vector<8x64xf32> to vector<1x64xf32>
    %120 = vector.broadcast %119 : vector<1x64xf32> to vector<8x64xf32>
    %121 = arith.mulf %118, %120 : vector<8x64xf32>
    %c57_i32 = arith.constant 57 : i32
    %122 = tpu.dynamic_rotate %98 by %c57_i32 dim 1 : vector<8x64xf32>, i32 -> vector<8x64xf32>
    %123 = vector.extract_strided_slice %101 {offsets = [5, 0], sizes = [1, 64], strides = [1, 1]} : vector<8x64xf32> to vector<1x64xf32>
    %124 = vector.broadcast %123 : vector<1x64xf32> to vector<8x64xf32>
    %125 = arith.mulf %122, %124 : vector<8x64xf32>
    %c56_i32 = arith.constant 56 : i32
    %126 = tpu.dynamic_rotate %98 by %c56_i32 dim 1 : vector<8x64xf32>, i32 -> vector<8x64xf32>
    %127 = vector.extract_strided_slice %101 {offsets = [6, 0], sizes = [1, 64], strides = [1, 1]} : vector<8x64xf32> to vector<1x64xf32>
    %128 = vector.broadcast %127 : vector<1x64xf32> to vector<8x64xf32>
    %129 = arith.mulf %126, %128 : vector<8x64xf32>
    %c55_i32 = arith.constant 55 : i32
    %130 = tpu.dynamic_rotate %98 by %c55_i32 dim 1 : vector<8x64xf32>, i32 -> vector<8x64xf32>
    %131 = vector.extract_strided_slice %101 {offsets = [7, 0], sizes = [1, 64], strides = [1, 1]} : vector<8x64xf32> to vector<1x64xf32>
    %132 = vector.broadcast %131 : vector<1x64xf32> to vector<8x64xf32>
    %133 = arith.mulf %130, %132 : vector<8x64xf32>
    %134 = tpu.concatenate %105, %109, %113, %117, %98, %121, %125, %129, %133 in 0 : vector<8x64xf32>, vector<8x64xf32>, vector<8x64xf32>, vector<8x64xf32>, vector<8x64xf32>, vector<8x64xf32>, vector<8x64xf32>, vector<8x64xf32>, vector<8x64xf32> -> vector<72x64xf32>
    %cst_46 = arith.constant dense<0.000000e+00> : vector<8x64xf32>
    %135 = tpu.matmul %99, %134, %cst_46 {dimension_numbers = #tpu.dot_dimension_numbers<[1], [0], [0], [1], [0, 0, 1, 1], [], []>} : vector<8x72xf32>, vector<72x64xf32>, vector<8x64xf32> -> vector<8x64xf32>
    %136 = vector.broadcast %100 : vector<8x1xf32> to vector<8x64xf32>
    %137 = arith.addf %135, %136 : vector<8x64xf32>
    %138 = arith.addf %5, %137 : vector<8x64xf32>
    %cst_47 = arith.constant 0.707106769 : f32
    %139 = vector.broadcast %cst_47 : f32 to vector<8x64xf32>
    %140 = arith.mulf %138, %139 : vector<8x64xf32>
    %c0_48 = arith.constant 0 : index
    %c0_49 = arith.constant 0 : index
    %c0_50 = arith.constant 0 : index
    %141 = vector.load %arg14[%c0_48, %c0_49, %c0_50] : memref<1x8x64xf32, #tpu.memory_space<vmem>>, vector<1x8x64xf32>
    %142 = vector.shape_cast %141 : vector<1x8x64xf32> to vector<8x64xf32>
    %143 = vector.shape_cast %140 : vector<8x64xf32> to vector<1x8x64xf32>
    tpu.vector_store %arg14[%c0_48, %c0_49, %c0_50], %143 {strides = array<i32>} : memref<1x8x64xf32, #tpu.memory_space<vmem>>, vector<1x8x64xf32>,
    return
  }
  func.func @transform_0(%arg0: i32) -> (i32, i32, i32) {
    %c0_i32 = arith.constant 0 : i32
    %c0_i32_0 = arith.constant 0 : i32
    %c0_i32_1 = arith.constant 0 : i32
    return %arg0, %c0_i32, %c0_i32_0 : i32, i32, i32
  }
  func.func @transform_1(%arg0: i32) -> (i32, i32) {
    %c0_i32 = arith.constant 0 : i32
    %c0_i32_0 = arith.constant 0 : i32
    %c0_i32_1 = arith.constant 0 : i32
    return %c0_i32, %c0_i32_0 : i32, i32
  }
  func.func @transform_2(%arg0: i32) -> (i32, i32) {
    %c0_i32 = arith.constant 0 : i32
    %c0_i32_0 = arith.constant 0 : i32
    %c0_i32_1 = arith.constant 0 : i32
    return %c0_i32, %c0_i32_0 : i32, i32
  }
  func.func @transform_3(%arg0: i32) -> (i32, i32) {
    %c0_i32 = arith.constant 0 : i32
    %c0_i32_0 = arith.constant 0 : i32
    %c0_i32_1 = arith.constant 0 : i32
    return %c0_i32, %c0_i32_0 : i32, i32
  }
  func.func @transform_4(%arg0: i32) -> (i32, i32) {
    %c0_i32 = arith.constant 0 : i32
    %c0_i32_0 = arith.constant 0 : i32
    %c0_i32_1 = arith.constant 0 : i32
    return %c0_i32, %c0_i32_0 : i32, i32
  }
  func.func @transform_5(%arg0: i32) -> (i32, i32) {
    %c0_i32 = arith.constant 0 : i32
    %c0_i32_0 = arith.constant 0 : i32
    %c0_i32_1 = arith.constant 0 : i32
    return %c0_i32, %c0_i32_0 : i32, i32
  }
  func.func @transform_6(%arg0: i32) -> (i32, i32) {
    %c0_i32 = arith.constant 0 : i32
    %c0_i32_0 = arith.constant 0 : i32
    %c0_i32_1 = arith.constant 0 : i32
    return %c0_i32, %c0_i32_0 : i32, i32
  }
  func.func @transform_7(%arg0: i32) -> (i32, i32) {
    %c0_i32 = arith.constant 0 : i32
    %c0_i32_0 = arith.constant 0 : i32
    %c0_i32_1 = arith.constant 0 : i32
    return %c0_i32, %c0_i32_0 : i32, i32
  }
  func.func @transform_8(%arg0: i32) -> (i32, i32) {
    %c0_i32 = arith.constant 0 : i32
    %c0_i32_0 = arith.constant 0 : i32
    %c0_i32_1 = arith.constant 0 : i32
    return %c0_i32, %c0_i32_0 : i32, i32
  }
  func.func @transform_9(%arg0: i32) -> (i32, i32) {
    %c0_i32 = arith.constant 0 : i32
    %c0_i32_0 = arith.constant 0 : i32
    %c0_i32_1 = arith.constant 0 : i32
    return %c0_i32, %c0_i32_0 : i32, i32
  }
  func.func @transform_10(%arg0: i32) -> (i32, i32) {
    %c0_i32 = arith.constant 0 : i32
    %c0_i32_0 = arith.constant 0 : i32
    %c0_i32_1 = arith.constant 0 : i32
    return %c0_i32, %c0_i32_0 : i32, i32
  }
  func.func @transform_11(%arg0: i32) -> (i32, i32) {
    %c0_i32 = arith.constant 0 : i32
    %c0_i32_0 = arith.constant 0 : i32
    %c0_i32_1 = arith.constant 0 : i32
    return %c0_i32, %c0_i32_0 : i32, i32
  }
  func.func @transform_12(%arg0: i32) -> (i32, i32) {
    %c0_i32 = arith.constant 0 : i32
    %c0_i32_0 = arith.constant 0 : i32
    %c0_i32_1 = arith.constant 0 : i32
    return %c0_i32, %c0_i32_0 : i32, i32
  }
  func.func @transform_13(%arg0: i32) -> (i32, i32, i32) {
    %c0_i32 = arith.constant 0 : i32
    %c0_i32_0 = arith.constant 0 : i32
    %c0_i32_1 = arith.constant 0 : i32
    return %arg0, %c0_i32, %c0_i32_0 : i32, i32, i32
  }
}

</mosaic_0001>

<bundles_post_ra>
// kernel: tpu_custom_call.1
= control target key start
LH: loop header
LB: loop body
LE: loop exit
PB: predicated region body
PF: predicated region fallthrough
CT: control target
= control target key end

     0   :  { %s2156_s0 = inlined_call_operand.vmem [shape: f32[2,8,256], index: 0, kind: input, shape index: {}]   ;;  %s2157_s1 = inlined_call_operand.vmem [shape: f32[8,72], index: 1, kind: input, shape index: {}]   ;;  %s2158_s2 = inlined_call_operand.vmem [shape: f32[8,1], index: 2, kind: input, shape index: {}]   ;;  %s2159_s3 = inlined_call_operand.vmem [shape: f32[8,72], index: 3, kind: input, shape index: {}]   ;;  %s2160_s4 = inlined_call_operand.vmem [shape: f32[8,1], index: 4, kind: input, shape index: {}]   ;;  %s2161_s5 = inlined_call_operand.vmem [shape: f32[8,8], index: 5, kind: input, shape index: {}]   ;;  %s2162_s6 = inlined_call_operand.vmem [shape: f32[8,1], index: 6, kind: input, shape index: {}]   ;;  %s2163_s7 = inlined_call_operand.vmem [shape: f32[8,1], index: 7, kind: input, shape index: {}]   ;;  %s2164_s8 = inlined_call_operand.vmem [shape: f32[8,1], index: 8, kind: input, shape index: {}]   ;;  %s2165_s9 = inlined_call_operand.vmem [shape: f32[8,1], index: 9, kind: input, shape index: {}]   ;;  %s2166_s10 = inlined_call_operand.vmem [shape: f32[256,64], index: 10, kind: input, shape index: {}]   ;;  %s2167_s11 = inlined_call_operand.vmem [shape: f32[8,256], index: 11, kind: input, shape index: {}]   ;;  %s2168_s12 = inlined_call_operand.vmem [shape: f32[8,64], index: 12, kind: input, shape index: {}]   ;;  %s2169_s13 = inlined_call_operand.hbm [shape: f32[2,8,64], index: 13, kind: output, shape index: {}]  }
   0x1   :  { %2172 = sst [smem:[#allocation5_spill]] %s2156_s0 }
   0x2   :  { %2173 = sst [smem:[#allocation6_spill]] %s2157_s1 }
   0x3   :  { %2174 = sst [smem:[#allocation7_spill]] %s2162_s6 }
   0x4   :  { %18 = vsyncpa [#allocation3], 0 }
   0x5   :  { %20 = vsyncpa [#allocation3 + $0x1], 0  ;;  %s1739_s25 = smov 0   ;;  %s1741_s26 = smov 0  }
   0x6   :  { %s1743_s27 = smov 0   ;;  %s1745_s28 = smov 0  }
   0x7 LB: > { %s1760_s29 = sadd.s32 4294967295, %s1639_s28   ;;  %s1267_s30 = sadd.s32 4294967294, %s1639_s28   ;;  %s1639_s28 = sphi %s1745_s28, %s2185_s28   ;;  %s1635_s27 = sphi %s1743_s27, %s2184_s27   ;;  %s1631_s26 = sphi %s1741_s26, %s2183_s26   ;;  %s1627_s25 = sphi %s1739_s25, %s2182_s25  }
   0x8   : > { %s1764_s14 = sadd.s32 1, %s1639_s28   ;;  %s311_s15 = sadd.s32 1, %s1635_s27 }
   0x9   : > { %s308_s16 = ssub.s32 %s1639_s28, %s1764_s14  ;;  %p321_p0 = scmp.ne.s32.totalorder %s1635_s27, %s1631_s26 }
   0xa   : > { %p309_p1 = scmp.eq.s32.totalorder %s308_s16, 0  ;;  %p322_p2 = scmp.eq.s32.totalorder %s1760_s29, 1 }
   0xb   : > { %p327_p3 = scmp.ne.s32.totalorder %s1631_s26, %s1627_s25  ;;  %p328_p4 = scmp.eq.s32.totalorder %s1267_s30, 1 }
   0xc   : > { %s1775_s17 = scalar_select %p309_p1, %s1635_s27, %s311_s15  }
   0xd   : > { %p1777_p5 = por %p322_p2, %p321_p0  ;;  %p1781_p6 = por %p328_p4, %p327_p3 }
   0xe   : > { %p1270_p7 = scmp.ge.s32.totalorder %s1639_s28, 1  ;;  %p390_p8 = scmp.lt.s32.totalorder %s1639_s28, 3 }
  0x10   : > { %p391_p9 = pnand %p1270_p7, %p390_p8 }
  0x11   : > { %p434_p10 = scmp.lt.s32.totalorder (!%p391_p9), %s1760_s29, 1  ;;  %s2177_s0 = sld [smem:[#allocation5_spill]] (!%p391_p9)  ;;  %v1641_v10 = vmov (!%p391_p9), 0   ;;  %v545_v17 = vld [vmem:[%s2163_s7] sm:$0xff] (!%p391_p9)  ;;  %v1650_v28 = vmov (!%p391_p9), 0.0   ;;  %v458_v31 = vld [vmem:[%s2166_s10 + $0x88] sm:$0xff] (!%p391_p9) }
  0x12   : > { %394 = sbr.rel (%p391_p9) target bundleno = 2239 (0x8bf), region = 72  ;;  %1551 = vset.pattern.permute.xlu1 (!%p391_p9), %v1641_v10  ;;  %1552 = vset.pattern.permute.xlu0 (!%p391_p9), %v1641_v10  ;;  %s2178_s6 = sld [smem:[#allocation7_spill]] (!%p391_p9)  ;;  %v583_v29 = vld [vmem:[%s2158_s2] sm:$0xff] (!%p391_p9)  ;;  %v442_v34 = vld [vmem:[%s2166_s10 + $0x8] sm:$0xff] (!%p391_p9)  ;;  %v459_v35 = vld [vmem:[%s2166_s10 + $0x90] sm:$0xff] (!%p391_p9)  ;;  %vm729_vm10 = vcmask (!%p391_p9), 588800  }
  0x13   : > { %s1643_s22 = smov (!%p391_p9), 16   ;;  %s2170_s23 = smov (!%p391_p9), 1   ;;  %797 = vmatprep.mubr.f32.mxu1 (!%p391_p9), %v1650_v28  ;;  %v457_v30 = vld [vmem:[%s2166_s10 + $0x80] sm:$0xff] (!%p391_p9)  ;;  %v460_v36 = vld [vmem:[%s2166_s10 + $0x98] sm:$0xff] (!%p391_p9)  ;;  %v443_v39 = vld [vmem:[%s2166_s10 + $0x10] sm:$0xff] (!%p391_p9)  ;;  %vm876_vm11 = vcmask (!%p391_p9), 523264  }
  0x14   : > { %s1646_s30 = smov (!%p391_p9), 15   ;;  %s1647_s15 = smov (!%p391_p9), 113   ;;  %v441_v32 = vld [vmem:[%s2166_s10] sm:$0xff] (!%p391_p9)  ;;  %v1839_v33 = vpack.c.bf16 (!%p391_p9), %v458_v31, %v457_v30  ;;  %v1852_v38 = vpack.c.bf16 (!%p391_p9), %v460_v36, %v459_v35  ;;  %v444_v40 = vld [vmem:[%s2166_s10 + $0x18] sm:$0xff] (!%p391_p9)  ;;  %v462_v42 = vld [vmem:[%s2166_s10 + $0xa8] sm:$0xff] (!%p391_p9)  ;;  %vm909_vm13 = vcmask (!%p391_p9), 1048064  }
  0x15   : > { %s1648_s16 = smov (!%p391_p9), 112   ;;  %v1850_v37 = vpack.c.bf16 (!%p391_p9), %v442_v34, %v441_v32  ;;  %v461_v41 = vld [vmem:[%s2166_s10 + $0xa0] sm:$0xff] (!%p391_p9)  ;;  %v1869_v43 = vpack.c.bf16 (!%p391_p9), %v444_v40, %v443_v39  ;;  %v446_v46 = vld [vmem:[%s2166_s10 + $0x28] sm:$0xff] (!%p391_p9)  ;;  %v463_v47 = vld [vmem:[%s2166_s10 + $0xb0] sm:$0xff] (!%p391_p9)  ;;  %s2179_s1 = sld [smem:[#allocation6_spill]] (!%p391_p9)  ;;  %vm1667_vm14 = vmmov (!%p391_p9), 0  }
  0x16   : > { %1391 = vmatprep.subr.bf16.mxu0 (!%p391_p9), %v1839_v33  ;;  %v1871_v44 = vpack.c.bf16 (!%p391_p9), %v462_v42, %v461_v41  ;;  %v445_v45 = vld [vmem:[%s2166_s10 + $0x20] sm:$0xff] (!%p391_p9)  ;;  %v464_v48 = vld [vmem:[%s2166_s10 + $0xb8] sm:$0xff] (!%p391_p9)  ;;  %v447_v51 = vld [vmem:[%s2166_s10 + $0x30] sm:$0xff] (!%p391_p9)  ;;  %vm1118_vm15 = vcmask (!%p391_p9), 64512  }
  0x17   : > { %1393 = vmatpush3.bf16.msra.mxu0 (!%p391_p9), %v1850_v37  ;;  %v1887_v49 = vpack.c.bf16 (!%p391_p9), %v446_v46, %v445_v45  ;;  %v1889_v50 = vpack.c.bf16 (!%p391_p9), %v464_v48, %v463_v47  ;;  %v448_v52 = vld [vmem:[%s2166_s10 + $0x38] sm:$0xff] (!%p391_p9)  ;;  %v465_v53 = vld [vmem:[%s2166_s10 + $0xc0] sm:$0xff] (!%p391_p9)  ;;  %v466_v54 = vld [vmem:[%s2166_s10 + $0xc8] sm:$0xff] (!%p391_p9) }
  0x18   : > { %v544_v14 = vld [vmem:[%s2178_s6] sm:$0xff] (!%p391_p9)  ;;  %1395 = vmatprep.subr.bf16.mxu0 (!%p391_p9), %v1852_v38  ;;  %v1905_v55 = vpack.c.bf16 (!%p391_p9), %v448_v52, %v447_v51  ;;  %v1907_v56 = vpack.c.bf16 (!%p391_p9), %v466_v54, %v465_v53  ;;  %v450_v58 = vld [vmem:[%s2166_s10 + $0x48] sm:$0xff] (!%p391_p9)  ;;  %v467_v59 = vld [vmem:[%s2166_s10 + $0xd0] sm:$0xff] (!%p391_p9)  ;;  %s1657_s6 = smov (!%p391_p9), 7  }
  0x19   : > { %s435_s20 = scalar_select %p434_p10, %s1760_s29, 1  ;;  %v449_v57 = vld [vmem:[%s2166_s10 + $0x40] sm:$0xff]  ;;  %v468_v60 = vld [vmem:[%s2166_s10 + $0xd8] sm:$0xff]  ;;  %v451_v63 = vld [vmem:[%s2166_s10 + $0x50] sm:$0xff] }
  0x1a   : > { %v1923_v61 = vpack.c.bf16 %v450_v58, %v449_v57  ;;  %v1925_v62 = vpack.c.bf16 %v468_v60, %v467_v59 }
  0x1b   : > { %s1281_s21 = sshll.u32 %s435_s20, 4  ;;  %s1649_s20 = smov 111   ;;  %1397 = vmatpush3.bf16.msra.mxu0 %v1869_v43 }
  0x1c   : > { %s438_s24 = scalar_lea.vmem %s2177_s0, %s1281_s21  ;;  %s1642_s21 = smov 17   ;;  %1399 = vmatprep.subr.bf16.mxu0 %v1871_v44 }
  0x1d   : > { %v1792_v0 = vld [vmem:[%s438_s24] sm:$0xff]  ;;  %v440_v1 = vld [vmem:[%s438_s24 + $0x8] sm:$0xff]  ;;  %s2171_s24 = smov 127   ;;  %s1656_s0 = smov 63  }
  0x1e   : > { %v546_v2 = vadd.f32 %v440_v1, %v1792_v0  ;;  %537 = vmatprep.mubr.f32.mxu0 %v440_v1 }
  0x1f   : > { %1401 = vmatpush3.bf16.msra.mxu0 %v1887_v49 }
  0x20   : > { %547 = vadd.xlane.f32.xlu0 %v546_v2  ;;  %1403 = vmatprep.subr.bf16.mxu0 %v1889_v50  ;;  %v469_v2 = vld [vmem:[%s2166_s10 + $0xe0] sm:$0xff] }
  0x23   : > { %1405 = vmatpush3.bf16.msra.mxu0 %v1905_v55 }
  0x24   : > { %1407 = vmatprep.subr.bf16.mxu0 %v1907_v56 }
  0x27   : > { %1409 = vmatpush3.bf16.msra.mxu0 %v1923_v61 }
  0x28   : > { %1411 = vmatprep.subr.bf16.mxu0 %v1925_v62 }
  0xad   : > { %v548_v3 = vpop.xlane.xlu0 %547 }
  0xae   : > { %v550_v4 = vmul.f32 0.00390625, %v548_v3  ;;  %v470_v3 = vld [vmem:[%s2166_s10 + $0xe8] sm:$0xff] }
  0xb0   : > { %v551_v5 = vsub.f32 %v1792_v0, %v550_v4  ;;  %v552_v6 = vsub.f32 %v440_v1, %v550_v4  ;;  %v452_v1 = vld [vmem:[%s2166_s10 + $0x58] sm:$0xff] }
  0xb1   : > { %v1941_v4 = vpack.c.bf16 %v452_v1, %v451_v63 }
  0xb2   : > { %v553_v7 = vmul.f32 %v551_v5, %v551_v5  ;;  %v554_v8 = vmul.f32 %v552_v6, %v552_v6 }
  0xb3   : > { %1413 = vmatpush3.bf16.msra.mxu0 %v1941_v4 }
  0xb4   : > { %v555_v9 = vadd.f32 %v554_v8, %v553_v7  ;;  %v454_v7 = vld [vmem:[%s2166_s10 + $0x68] sm:$0xff] }
  0xb6   : > { %556 = vadd.xlane.f32.xlu0 %v555_v9  ;;  %v590_v9 = vlaneseq }
  0xb8   : > { %v1956_v10 = vshrl.u32 %v590_v9, 7 }
  0xba   : > { %v1987_v42 = vsub.s32 2, %v1956_v10  ;;  %v1990_v45 = vsub.s32 3, %v1956_v10  ;;  %v1996_v48 = vsub.s32 4, %v1956_v10 }
 0x143   : > { %v557_v11 = vpop.xlane.xlu0 %556 }
 0x144   : > { %v558_v12 = vmul.f32 0.00390625, %v557_v11 }
 0x146   : > { %v559_v13 = vadd.f32 1e-05, %v558_v12  ;;  %v1958_v12 = vand.u32 127, %v590_v9 }
 0x148   : > { %1573 = vrsqrt.f32 %v559_v13  ;;  %v1961_v13 = vsub.s32 0, %v1956_v10  ;;  %vm592_vm2 = vcmp.lt.s32.totalorder %v1958_v12, 17  ;;  %vm609_vm3 = vcmp.lt.s32.totalorder %v1958_v12, 16 }
 0x149   : > { %vm626_vm4 = vcmp.lt.s32.totalorder %v1958_v12, 15  ;;  %vm643_vm5 = vcmp.lt.s32.totalorder %v1958_v12, 1  ;;  %vm660_vm6 = vcmp.lt.s32.totalorder %v1958_v12, 127  ;;  %vm677_vm7 = vcmp.lt.s32.totalorder %v1958_v12, 113 }
 0x14a   : > { %vm694_vm8 = vcmp.lt.s32.totalorder %v1958_v12, 112  ;;  %vm711_vm9 = vcmp.lt.s32.totalorder %v1958_v12, 111 }
 0x152   : > { %v1574_v15 = vpop.eup %1573 }
 0x153   : > { %v561_v16 = vmul.f32 %v1574_v15, %v544_v14  ;;  %v1966_v14 = vld [vmem:[%s2167_s11] sm:$0xff]  ;;  %v1969_v15 = vsub.s32 1, %v1956_v10 }
 0x154   : > { %v632_v47 = vrot.slane %v1966_v14, %v1987_v42  ;;  %v649_v53 = vrot.slane %v1966_v14, %v1990_v45  ;;  %v666_v1 = vrot.slane %v1966_v14, %v1996_v48 }
 0x155   : > { %564 = vperm.xlu1 %1551, %v561_v16   ;;  %v1974_v16 = vld [vmem:[%s2167_s11 + $0x8] sm:$0xff] }
 0x156   : > { %v636_v52 = vrot.slane %v1974_v16, %v1987_v42  ;;  %v653_v54 = vrot.slane %v1974_v16, %v1990_v45 }
 0x159   : > { %571 = vperm.xlu1 %1551, %v545_v17  }
 0x1d4   : > { %v565_v18 = vpop.permute.xlu1 %564 }
 0x1d5   : > { %v567_v19 = vmul.f32 %v565_v18, %v551_v5  ;;  %v568_v20 = vmul.f32 %v565_v18, %v552_v6  ;;  %v1943_v5 = vpack.c.bf16 %v470_v3, %v469_v2  ;;  %v453_v6 = vld [vmem:[%s2166_s10 + $0x60] sm:$0xff]  ;;  %v670_v2 = vrot.slane %v1974_v16, %v1996_v48 }
 0x1d6   : > { %v1953_v8 = vpack.c.bf16 %v454_v7, %v453_v6 }
 0x1d7   : > { %1415 = vmatprep.subr.bf16.mxu0 %v1943_v5 }
 0x1d8   : > { %v572_v21 = vpop.permute.xlu1 %571  ;;  %1417 = vmatpush3.bf16.msra.mxu0 %v1953_v8 }
 0x1d9   : > { %v574_v22 = vadd.f32 %v572_v21, %v567_v19  ;;  %v575_v23 = vadd.f32 %v572_v21, %v568_v20  ;;  %v598_v19 = vrot.slane %v1966_v14, %v1961_v13  ;;  %v615_v20 = vrot.slane %v1966_v14, %v1969_v15 }
 0x1da   : > { %v602_v21 = vrot.slane %v1974_v16, %v1961_v13 }
 0x1db   : > { %vm576_vm0 = vcmp.gt.f32.partialorder %v574_v22, 0.0  ;;  %vm577_vm1 = vcmp.gt.f32.partialorder %v575_v23, 0.0  ;;  %v578_v24 = vmul.f32 0.2, %v574_v22  ;;  %v579_v25 = vmul.f32 0.2, %v575_v23 }
 0x1dd   : > { %v1802_v26 = vsel %vm576_vm0, %v574_v22, %v578_v24  ;;  %v1804_v27 = vsel %vm577_vm1, %v575_v23, %v579_v25  ;;  %v619_v22 = vrot.slane %v1974_v16, %v1969_v15 }
 0x1de   : > { %588 = vrot.lane.b32.xlu1 %v1804_v27, %s1642_s21  ;;  %586 = vrot.lane.b32.xlu0 %v1802_v26, %s1642_s21  ;;  %s1652_s21 = smov 55  }
 0x1e2   : > { %605 = vrot.lane.b32.xlu1 %v1802_v26, %s1643_s22  ;;  %641 = vrot.lane.b32.xlu0 %v1804_v27, %s2170_s23 }
 0x1e6   : > { %607 = vrot.lane.b32.xlu1 %v1804_v27, %s1643_s22  ;;  %658 = vrot.lane.b32.xlu0 %v1804_v27, %s2171_s24  ;;  %s1653_s22 = smov 64  }
 0x1ea   : > { %622 = vrot.lane.b32.xlu1 %v1802_v26, %s1646_s30  ;;  %675 = vrot.lane.b32.xlu0 %v1804_v27, %s1647_s15 }
 0x1ee   : > { %624 = vrot.lane.b32.xlu1 %v1804_v27, %s1646_s30  ;;  %692 = vrot.lane.b32.xlu0 %v1804_v27, %s1648_s16  ;;  %s1655_s30 = smov 57  }
 0x1f2   : > { %639 = vrot.lane.b32.xlu1 %v1802_v26, %s2170_s23  ;;  %709 = vrot.lane.b32.xlu0 %v1804_v27, %s1649_s20  ;;  %s1654_s23 = smov 56  }
 0x1f6   : > { %656 = vrot.lane.b32.xlu1 %v1802_v26, %s2171_s24  ;;  %s1658_s24 = smov 9  }
 0x1fa   : > { %673 = vrot.lane.b32.xlu1 %v1802_v26, %s1647_s15  ;;  %s2181_s15 = smov 127  }
 0x1fe   : > { %690 = vrot.lane.b32.xlu1 %v1802_v26, %s1648_s16  ;;  %s2180_s16 = smov 1  }
 0x202   : > { %707 = vrot.lane.b32.xlu1 %v1802_v26, %s1649_s20  ;;  %s1651_s20 = smov 8  }
 0x206   : > { %726 = vperm.xlu1 %1551, %v583_v29  }
 0x250   : > { %v589_v11 = vpop.permute.xlu1 %588  ;;  %v587_v17 = vpop.permute.xlu0 %586 }
 0x251   : > { %v593_v23 = vsel %vm592_vm2, %v587_v17, %v589_v11  ;;  %v594_v24 = vsel %vm592_vm2, %v589_v11, %v587_v17 }
 0x252   : > { %v603_v31 = vmul.f32 %v598_v19, %v594_v24  ;;  %v604_v34 = vmul.f32 %v602_v21, %v593_v23 }
 0x254   : > { %v606_v18 = vpop.permute.xlu1 %605  ;;  %v642_v36 = vpop.permute.xlu0 %641 }
 0x258   : > { %v608_v25 = vpop.permute.xlu1 %607  ;;  %v659_v51 = vpop.permute.xlu0 %658 }
 0x259   : > { %v610_v29 = vsel %vm609_vm3, %v606_v18, %v608_v25  ;;  %v611_v30 = vsel %vm609_vm3, %v608_v25, %v606_v18  ;;  %v2014_v25 = vsub.s32 6, %v1956_v10 }
 0x25a   : > { %v620_v32 = vmul.f32 %v615_v20, %v611_v30  ;;  %v621_v35 = vmul.f32 %v619_v22, %v610_v29  ;;  %v2011_v22 = vsub.s32 5, %v1956_v10 }
 0x25c   : > { %v623_v39 = vpop.permute.xlu1 %622  ;;  %v1422_v40 = vpack.c.bf16 %v621_v35, %v604_v34  ;;  %v1424_v41 = vpack.c.bf16 %v620_v32, %v603_v31  ;;  %v676_v11 = vpop.permute.xlu0 %675  ;;  %v683_v32 = vrot.slane %v1966_v14, %v2011_v22  ;;  %v2022_v34 = vsub.s32 7, %v1956_v10 }
 0x25e   : > { %1423 = vmatprep.subr.bf16.mxu1 %v1422_v40 }
 0x25f   : > { %1425 = vmatpush1.bf16.msra.mxu1 %v1424_v41 }
 0x260   : > { %v625_v46 = vpop.permute.xlu1 %624  ;;  %v693_v35 = vpop.permute.xlu0 %692 }
 0x261   : > { %v627_v57 = vsel %vm626_vm4, %v623_v39, %v625_v46  ;;  %v628_v58 = vsel %vm626_vm4, %v625_v46, %v623_v39  ;;  %v700_v39 = vrot.slane %v1966_v14, %v2014_v25 }
 0x262   : > { %v637_v3 = vmul.f32 %v632_v47, %v628_v58  ;;  %v638_v6 = vmul.f32 %v636_v52, %v627_v57  ;;  %v721_v47 = vrot.slane %v1974_v16, %v2022_v34 }
 0x264   : > { %v640_v59 = vpop.permute.xlu1 %639  ;;  %v710_v57 = vpop.permute.xlu0 %709 }
 0x265   : > { %v644_v60 = vsel %vm643_vm5, %v640_v59, %v642_v36  ;;  %v645_v63 = vsel %vm643_vm5, %v642_v36, %v640_v59  ;;  %v687_v36 = vrot.slane %v1974_v16, %v2011_v22 }
 0x266   : > { %v654_v7 = vmul.f32 %v649_v53, %v645_v63  ;;  %v655_v9 = vmul.f32 %v653_v54, %v644_v60  ;;  %v717_v63 = vrot.slane %v1966_v14, %v2022_v34 }
 0x268   : > { %v657_v17 = vpop.permute.xlu1 %656  ;;  %v1426_v18 = vpack.c.bf16 %v655_v9, %v638_v6  ;;  %v1428_v19 = vpack.c.bf16 %v654_v7, %v637_v3 }
 0x269   : > { %v661_v20 = vsel %vm660_vm6, %v657_v17, %v659_v51  ;;  %v662_v21 = vsel %vm660_vm6, %v659_v51, %v657_v17  ;;  %v875_v17 = vld [vmem:[%s2165_s9] sm:$0xff] }
 0x26a   : > { %v671_v23 = vmul.f32 %v666_v1, %v661_v20  ;;  %v672_v24 = vmul.f32 %v670_v2, %v662_v21  ;;  %1427 = vmatprep.subr.bf16.mxu1 %v1426_v18  ;;  %v874_v21 = vld [vmem:[%s2164_s8] sm:$0xff] }
 0x26b   : > { %1429 = vmatpush1.bf16.msra.mxu1 %v1428_v19 }
 0x26c   : > { %v674_v29 = vpop.permute.xlu1 %673  ;;  %v1430_v30 = vpack.c.bf16 %v672_v24, %v1804_v27  ;;  %v1432_v31 = vpack.c.bf16 %v671_v23, %v1802_v26  ;;  %v704_v27 = vrot.slane %v1974_v16, %v2014_v25  ;;  %v582_v16 = vld [vmem:[%s2179_s1] sm:$0xff] }
 0x26d   : > { %v678_v26 = vsel %vm677_vm7, %v674_v29, %v676_v11  ;;  %v679_v40 = vsel %vm677_vm7, %v676_v11, %v674_v29  ;;  %v908_v29 = vld [vmem:[%s2168_s12] sm:$0xff] }
 0x26e   : > { %1431 = vmatprep.subr.bf16.mxu1 %v1430_v30  ;;  %v688_v51 = vmul.f32 %v683_v32, %v678_v26  ;;  %v689_v52 = vmul.f32 %v687_v36, %v679_v40  ;;  %v955_v30 = vrot.slane %v908_v29, %v1996_v48  ;;  %v919_v32 = vrot.slane %v908_v29, %v1961_v13 }
 0x26f   : > { %1433 = vmatpush1.bf16.msra.mxu1 %v1432_v31  ;;  %v973_v31 = vrot.slane %v908_v29, %v2014_v25  ;;  %v928_v48 = vrot.slane %v908_v29, %v1969_v15  ;;  %v982_v15 = vrot.slane %v908_v29, %v2022_v34 }
 0x270   : > { %v691_v41 = vpop.permute.xlu1 %690 }
 0x271   : > { %v695_v46 = vsel %vm694_vm8, %v691_v41, %v693_v35  ;;  %v696_v10 = vsel %vm694_vm8, %v693_v35, %v691_v41  ;;  %v937_v41 = vrot.slane %v908_v29, %v1987_v42 }
 0x272   : > { %v705_v53 = vmul.f32 %v700_v39, %v695_v46  ;;  %v706_v54 = vmul.f32 %v704_v27, %v696_v10  ;;  %v946_v46 = vrot.slane %v908_v29, %v1990_v45  ;;  %v964_v10 = vrot.slane %v908_v29, %v2011_v22 }
 0x274   : > { %v708_v58 = vpop.permute.xlu1 %707  ;;  %v1434_v59 = vpack.c.bf16 %v706_v54, %v689_v52  ;;  %v1436_v60 = vpack.c.bf16 %v705_v53, %v688_v51 }
 0x275   : > { %v713_v1 = vsel %vm711_vm9, %v710_v57, %v708_v58  ;;  %v712_v2 = vsel %vm711_vm9, %v708_v58, %v710_v57 }
 0x276   : > { %v723_v3 = vmul.f32 %v721_v47, %v713_v1  ;;  %1435 = vmatprep.subr.bf16.mxu1 %v1434_v59  ;;  %v722_v12 = vmul.f32 %v717_v63, %v712_v2 }
 0x277   : > { %1437 = vmatpush1.bf16.msra.mxu1 %v1436_v60 }
 0x278   : > { %749 = vmatprep.subr.mxu1 %v723_v3  ;;  %v1665_v3 = vmov 0.0|0.0  }
 0x27b   : > { %750 = vmatpush1.msra.mxu1 %v722_v12 }
 0x27c   : > { %1274 = vmatmul.mubr.msk.f32.vlgmr.msra.gmra.mrb[0].mxu1 %vm729_vm10, %v582_v16  ;;  %1439 = vmatprep.subr.bf16.mxu1 %v1839_v33  ;;  %v471_v33 = vld [vmem:[%s2166_s10 + $0xf0] sm:$0xff] }
 0x27d   : > { %1441 = vmatpush3.bf16.msra.mxu1 %v1850_v37  ;;  %v472_v37 = vld [vmem:[%s2166_s10 + $0xf8] sm:$0xff] }
 0x27e   : > { %1443 = vmatprep.subr.bf16.mxu1 %v1852_v38  ;;  %v1418_v38 = vpack.c.bf16 %v472_v37, %v471_v33 }
 0x280   : > { %1419 = vmatprep.subr.bf16.mxu0 %v1418_v38 }
 0x281   : > { %1445 = vmatpush3.bf16.msra.mxu1 %v1869_v43  ;;  %v455_v43 = vld [vmem:[%s2166_s10 + $0x70] sm:$0xff] }
 0x282   : > { %1447 = vmatprep.subr.bf16.mxu1 %v1871_v44  ;;  %v456_v44 = vld [vmem:[%s2166_s10 + $0x78] sm:$0xff] }
 0x285   : > { %1449 = vmatpush3.bf16.msra.mxu1 %v1887_v49  ;;  %v1420_v49 = vpack.c.bf16 %v456_v44, %v455_v43 }
 0x286   : > { %1451 = vmatprep.subr.bf16.mxu1 %v1889_v50 }
 0x287   : > { %1421 = vmatpush3.bf16.msra.mxu0 %v1420_v49 }
 0x288   : > { %1470 = vmatprep.subr.bf16.mxu0 %v1665_v3 }
 0x289   : > { %1453 = vmatpush3.bf16.msra.mxu1 %v1905_v55  ;;  %v727_v55 = vpop.permute.xlu1 %726 }
 0x28a   : > { %1455 = vmatprep.subr.bf16.mxu1 %v1907_v56  ;;  %538 = vmatmul.mubr.f32.vlgmr.msra.gmra.mrb[0].mxu0 %v1792_v0 }
 0x28b   : > { %1382 = vmatprep.mubr.msk.f32.mxu0 %vm1667_vm14, %v1650_v28 }
 0x28d   : > { %1457 = vmatpush3.bf16.msra.mxu1 %v1923_v61 }
 0x28e   : > { %1459 = vmatprep.subr.bf16.mxu1 %v1925_v62 }
 0x291   : > { %1461 = vmatpush3.bf16.msra.mxu1 %v1941_v4 }
 0x292   : > { %1463 = vmatprep.subr.bf16.mxu1 %v1943_v5 }
 0x295   : > { %1465 = vmatpush3.bf16.msra.mxu1 %v1953_v8 }
 0x296   : > { %1467 = vmatprep.subr.bf16.mxu1 %v1418_v38 }
 0x299   : > { %1469 = vmatpush3.bf16.msra.mxu1 %v1420_v49 }
 0x34f   : > { %v799_v50 = vpop.f32.mrb[0].mxu1 }
 0x350   : > { %v801_v56 = vpop.f32.mrb[1].mxu1  ;;  %v800_v62 = vadd.f32 %v799_v50, %v727_v55 }
 0x351   : > { %v802_v61 = vadd.f32 %v801_v56, %v727_v55 }
 0x353   : > { %868 = vmatprep.mubr.f32.mxu1 %v802_v61 }
 0x354   : > { %869 = vmatmul.mubr.f32.vlgmr.msra.gmra.mrb[2].mxu1 %v800_v62 }
 0x35d   : > { %v1314_v50 = vpop.f32.mrb[0].mxu0 }
 0x35e   : > { %v1315_v55 = vpop.f32.mrb[1].mxu0 }
 0x35f   : > { %v1316_v62 = vadd.f32 %v1315_v55, %v1314_v50 }
 0x427   : > { %v1349_v4 = vpop.f32.mrb[2].mxu1 }
 0x428   : > { %v1350_v5 = vpop.f32.mrb[3].mxu1 }
 0x429   : > { %v1351_v8 = vadd.f32 %v1350_v5, %v1349_v4 }
 0x42b   : > { %v877_v14 = vsel %vm876_vm11, %v1351_v8, 0.0 }
 0x42c   : > { %878 = vadd.xlane.f32.xlu0 %v877_v14 }
 0x4b9   : > { %v879_v6 = vpop.xlane.xlu0 %878 }
 0x4ba   : > { %v881_v7 = vmul.f32 0.015625, %v879_v6  ;;  %v907_v6 = vld [vmem:[%s2160_s4] sm:$0xff] }
 0x4bc   : > { %v882_v9 = vsub.f32 %v1351_v8, %v881_v7 }
 0x4be   : > { %v883_v11 = vmul.f32 %v882_v9, %v882_v9 }
 0x4c0   : > { %v884_v0 = vsel %vm876_vm11, %v883_v11, 0.0 }
 0x4c1   : > { %885 = vadd.xlane.f32.xlu1 %v884_v0 }
 0x4d2   : > { %899 = vperm.xlu1 %1551, %v875_v17  }
 0x54e   : > { %v886_v18 = vpop.xlane.xlu1 %885 }
 0x54f   : > { %v887_v19 = vmul.f32 0.015625, %v886_v18 }
 0x551   : > { %v888_v20 = vadd.f32 1e-05, %v887_v19 }
 0x552   : > { %v900_v39 = vpop.permute.xlu1 %899 }
 0x553   : > { %1575 = vrsqrt.f32 %v888_v20 }
 0x55d   : > { %v1576_v23 = vpop.eup %1575 }
 0x55e   : > { %v890_v24 = vmul.f32 %v1576_v23, %v874_v21 }
 0x560   : > { %893 = vperm.xlu0 %1552, %v890_v24  }
 0x564   : > { %957 = vrot.lane.b32.xlu0 %v955_v30, %s2180_s16  ;;  %s1659_s16 = smov 126  }
 0x568   : > { %975 = vrot.lane.b32.xlu0 %v973_v31, %s1651_s20  ;;  %s1660_s20 = smov 120  }
 0x56c   : > { %921 = vrot.lane.b32.xlu0 %v919_v32, %s1652_s21 }
 0x5df   : > { %v894_v35 = vpop.permute.xlu0 %893 }
 0x5e0   : > { %v896_v36 = vmul.f32 %v894_v35, %v882_v9 }
 0x5e2   : > { %v902_v27 = vadd.f32 %v900_v39, %v896_v36  ;;  %v906_v36 = vld [vmem:[%s2159_s3] sm:$0xff] }
 0x5e3   : > { %v958_v22 = vpop.permute.xlu0 %957 }
 0x5e4   : > { %v904_v26 = vmul.f32 0.2, %v902_v27  ;;  %vm903_vm12 = vcmp.gt.f32.partialorder %v902_v27, 0.0 }
 0x5e6   : > { %v905_v40 = vsel %vm903_vm12, %v902_v27, %v904_v26  ;;  %v543_v27 = vld [vmem:[%s2161_s5] sm:$0xff] }
 0x5e7   : > { %910 = vrot.lane.b32.xlu1 %v905_v40, %s1653_s22  ;;  %v976_v60 = vpop.permute.xlu0 %975 }
 0x5eb   : > { %930 = vrot.lane.b32.xlu1 %v928_v48, %s1654_s23  ;;  %s1662_s23 = smov 48   ;;  %v922_v12 = vpop.permute.xlu0 %921 }
 0x659   : > { %v911_v25 = vpop.permute.xlu1 %910 }
 0x65a   : > { %v912_v13 = vsel %vm909_vm13, %v911_v25, %v905_v40 }
 0x65b   : > { %913 = vrot.lane.b32.xlu1 %v912_v13, %s1653_s22  ;;  %s1661_s22 = smov 54  }
 0x65d   : > { %v931_v47 = vpop.permute.xlu1 %930 }
 0x65f   : > { %939 = vrot.lane.b32.xlu1 %v937_v41, %s1655_s30  ;;  %s1663_s30 = smov 47  }
 0x663   : > { %948 = vrot.lane.b32.xlu1 %v946_v46, %s1656_s0  ;;  %s1664_s0 = smov 46  }
 0x667   : > { %966 = vrot.lane.b32.xlu1 %v964_v10, %s1657_s6 }
 0x66b   : > { %984 = vrot.lane.b32.xlu1 %v982_v15, %s1658_s24 }
 0x6cd   : > { %v914_v51 = vpop.permute.xlu1 %913 }
 0x6ce   : > { %v915_v52 = vsel %vm909_vm13, %v914_v51, %v905_v40 }
 0x6cf   : > { %v933_v53 = vmul.f32 %v931_v47, %v915_v52  ;;  %v960_v59 = vmul.f32 %v958_v22, %v915_v52  ;;  %v978_v2 = vmul.f32 %v976_v60, %v915_v52  ;;  %v924_v16 = vmul.f32 %v922_v12, %v915_v52 }
 0x6d1   : > { %989 = vrot.lane.b32.xlu1 %v933_v53, %s2181_s15  ;;  %v940_v42 = vpop.permute.xlu1 %939 }
 0x6d2   : > { %v942_v54 = vmul.f32 %v940_v42, %v915_v52 }
 0x6d4   : > { %992 = vrot.lane.b32.xlu0 %v942_v54, %s1659_s16 }
 0x6d5   : > { %v949_v45 = vpop.permute.xlu1 %948 }
 0x6d6   : > { %v951_v57 = vmul.f32 %v949_v45, %v915_v52 }
 0x6d8   : > { %998 = vrot.lane.b32.xlu0 %v905_v40, %s1652_s21  ;;  %995 = vrot.lane.b32.xlu1 %v951_v57, %s1660_s20  ;;  %s1666_s21 = smov 73  }
 0x6d9   : > { %v967_v34 = vpop.permute.xlu1 %966 }
 0x6da   : > { %v969_v58 = vmul.f32 %v967_v34, %v915_v52 }
 0x6dc   : > { %1001 = vrot.lane.b32.xlu1 %v960_v59, %s1661_s22  ;;  %1004 = vrot.lane.b32.xlu0 %v969_v58, %s1662_s23  ;;  %s431_s23 = sand.u32 1, %s1631_s26  }
 0x6dd   : > { %v985_v63 = vpop.permute.xlu1 %984  ;;  %s1195_s20 = scalar_lea.sflag [#allocation3], %s431_s23 }
 0x6de   : > { %v987_v1 = vmul.f32 %v985_v63, %v915_v52 }
 0x6e0   : > { %1007 = vrot.lane.b32.xlu1 %v978_v2, %s1663_s30  ;;  %1010 = vrot.lane.b32.xlu0 %v987_v1, %s1664_s0  ;;  %s1271_s30 = sshll.u32 %s431_s23, 3  ;;  %s1278_s0 = sshll.u32 %s1760_s29, 7 }
 0x6e1   : > { %s2113_s16 = scalar_lea.hbm %s2169_s13, %s1278_s0  ;;  %s1668_s29 = smov [#allocation2]  }
 0x743   : > { %v990_v33 = vpop.permute.xlu1 %989 }
 0x744   : > { %v1553_v37 = vpack.i.bf16 %v990_v33, %v924_v16 }
 0x746   : > { %v993_v38 = vpop.permute.xlu0 %992  ;;  %1554 = vrot.lane.b32.xlu1 %v1553_v37, %s1666_s21 }
 0x74a   : > { %v999_v43 = vpop.permute.xlu0 %998  ;;  %v996_v44 = vpop.permute.xlu1 %995 }
 0x74b   : > { %v1558_v49 = vpack.i.bf16 %v996_v44, %v993_v38 }
 0x74d   : > { %1559 = vrot.lane.b32.xlu0 %v1558_v49, %s1666_s21 }
 0x74e   : > { %v1005_v56 = vpop.permute.xlu0 %1004  ;;  %v1002_v61 = vpop.permute.xlu1 %1001 }
 0x74f   : > { %v1563_v4 = vpack.i.bf16 %v1002_v61, %v999_v43 }
 0x751   : > { %1564 = vrot.lane.b32.xlu1 %v1563_v4, %s1666_s21 }
 0x752   : > { %v1008_v5 = vpop.permute.xlu1 %1007  ;;  %v1011_v14 = vpop.permute.xlu0 %1010 }
 0x753   : > { %v1568_v8 = vpack.i.bf16 %v1008_v5, %v1005_v56 }
 0x755   : > { %1034 = vrot.lane.b32.xlu1 %v1011_v14, %s1666_s21  ;;  %1569 = vrot.lane.b32.xlu0 %v1568_v8, %s1666_s21  ;;  %s433_s21 = scalar_lea.vmem [#allocation2], %s1271_s30  ;;  %s1581_s30 = sshll.u32 %s1668_s29, 4  ;;  %s1582_s30 = int_to_ptr.vmem [resolvable:$false] %s1581_s30 }
 0x756   : > { %s1208_s6 = sshll.u32 %s433_s21, 4  ;;  %s1583_s1 = scalar_lea.vmem %s1582_s30, 256  ;;  %s2115_s6 = int_to_ptr.vmem [resolvable:$true] %s1208_s6 }
 0x757   : > { %s1577_s22 = scalar_lea.vmem %s2115_s6, 128  ;;  %p1584_p0 = scmp.lt.s32.totalorder %s2115_s6, %s1582_s30 }
 0x758   : > { %p1578_p11 = scmp.ne.s32.totalorder %s2115_s6, %s1577_s22  ;;  %p1585_p1 = scmp.lt.s32.totalorder %s1583_s1, %s1577_s22 }
 0x759   : > { %1014 = vperm.xlu0 %1552, %v907_v6  }
 0x75a   : > { %p1579_p12 = pnand %p1578_p11, %p1777_p5  ;;  %p1586_p2 = por %p1585_p1, %p1584_p0 }
 0x75c   : > { %p1580_p13 = pneg %p1579_p12 }
 0x75e   : > { %p1587_p3 = pnand %p1586_p2, %p1580_p13 }
 0x7b8   : > { %v1555_v7 = vpop.permute.xlu1 %1554 }
 0x7b9   : > { %v1557_v9 = vunpack.i.h.bf16 %v1555_v7  ;;  %v1556_v11 = vunpack.i.l.bf16 %v1555_v7 }
 0x7bb   : > { %v1471_v0 = vpack.c.bf16 %v1557_v9, %v1556_v11 }
 0x7bd   : > { %1472 = vmatpush3.bf16.msra.mxu0 %v1471_v0 }
 0x7be   : > { %1473 = vmatprep.subr.bf16.mxu0 %v1665_v3 }
 0x7bf   : > { %v1560_v17 = vpop.permute.xlu0 %1559 }
 0x7c0   : > { %v1562_v18 = vunpack.i.h.bf16 %v1560_v17  ;;  %v1561_v19 = vunpack.i.l.bf16 %v1560_v17 }
 0x7c2   : > { %v1474_v20 = vpack.c.bf16 %v1562_v18, %v1561_v19 }
 0x7c3   : > { %v1565_v21 = vpop.permute.xlu1 %1564 }
 0x7c4   : > { %v1567_v23 = vunpack.i.h.bf16 %v1565_v21  ;;  %v1566_v24 = vunpack.i.l.bf16 %v1565_v21  ;;  %1475 = vmatpush3.bf16.msra.mxu0 %v1474_v20 }
 0x7c5   : > { %1476 = vmatprep.subr.bf16.mxu0 %v1665_v3 }
 0x7c6   : > { %v1477_v29 = vpack.c.bf16 %v1567_v23, %v1566_v24 }
 0x7c7   : > { %v1570_v30 = vpop.permute.xlu0 %1569  ;;  %v1035_v39 = vpop.permute.xlu1 %1034 }
 0x7c8   : > { %v1572_v31 = vunpack.i.h.bf16 %v1570_v30  ;;  %v1571_v32 = vunpack.i.l.bf16 %v1570_v30  ;;  %1478 = vmatpush3.bf16.msra.mxu0 %v1477_v29 }
 0x7c9   : > { %1479 = vmatprep.subr.bf16.mxu0 %v1665_v3 }
 0x7ca   : > { %v1480_v35 = vpack.c.bf16 %v1572_v31, %v1571_v32 }
 0x7cc   : > { %1481 = vmatpush3.bf16.msra.mxu0 %v1480_v35 }
 0x7cd   : > { %1380 = vmatprep.subr.mxu0 %v1650_v28 }
 0x7d0   : > { %1381 = vmatpush3.msra.mxu0 %v1035_v39 }
 0x7d1   : > { %1383 = vmatmul.mubr.msk.f32.vlgmr.msra.gmra.mrb[2].mxu0 %vm729_vm10, %v906_v36  ;;  %1385 = vmatprep.subr.mxu0 %v1650_v28 }
 0x7d2   : > { %1386 = vmatpush3.msra.mxu0 %v1316_v62  ;;  %1387 = vmatprep.mubr.msk.f32.mxu0 %vm1667_vm14, %v1650_v28 }
 0x7d8   : > { %v1015_v26 = vpop.permute.xlu0 %1014 }
 0x7d9   : > { %1388 = vmatmul.mubr.msk.f32.vlgmr.msra.gmra.mrb[2].mxu0 %vm1118_vm15, %v543_v27 }
 0x8ac   : > { %v1188_v40 = vpop.f32.mrb[2].mxu0 }
 0x8ad   : > { %v1482_v48 = vadd.f32 %v1188_v40, %v1015_v26  ;;  %v1389_v25 = vpop.f32.mrb[3].mxu0 }
 0x8af   : > { %v1192_v13 = vmul.f32 0.70710677, %v1482_v48 }
 0x8b1   : > { %1193 = vst.msk [vmem:[%s433_s21] sm:$0xff] %vm876_vm11, %v1192_v13 }
 0x8b2   : > { %1590 = shalt.err (!%p1587_p3)
}
 0x8b3   : > { %s1591_s23 = scalar_lea.hbm %s2113_s16, 128  ;;  %s1595_s24 = scalar_lea.hbm %s2169_s13, 256 }
 0x8b4   : > { %p1592_p4 = scmp.ne.s32.totalorder %s2113_s16, %s1591_s23  ;;  %p1596_p9 = scmp.lt.u32.totalorder %s2113_s16, %s2169_s13 }
 0x8b5   : > { %p1597_p10 = scmp.lt.u32.totalorder %s1595_s24, %s1591_s23  ;;  %p1599_p12 = scmp.lt.u32.totalorder %s1591_s23, %s2113_s16 }
 0x8b6   : > { %p1593_p7 = pnand %p1592_p4, %p1777_p5 }
 0x8b7   : > { %p1598_p11 = por %p1597_p10, %p1596_p9 }
 0x8b8   : > { %p1594_p8 = pneg %p1593_p7 }
 0x8b9   : > { %p1600_p13 = por %p1599_p12, %p1598_p11 }
 0x8bb   : > { %p1601_p0 = pnand %p1600_p13, %p1594_p8 }
 0x8bd   : > { %1604 = shalt.err (!%p1601_p0)
}
 0x8be   : > { %1485 = dma.vmem_to_hbm [thread:$0]  (%p1777_p5), %s2115_s6, 128, %s2113_s16, %s1195_s20  }
 0x8bf PF: > { %p1491_p1 = scmp.ge.s32.totalorder %s1639_s28, 2  ;;  %s1220_s1 = sand.u32 1, %s1627_s25  }
 0x8c0   : > { %s1221_s22 = scalar_lea.sflag [#allocation3], %s1220_s1 }
 0x8c1   : > { %p1488_p2 = pnand %p1491_p1, %p1781_p6 }
 0x8c3   : > { %1622 = dma.done.wait (!%p1488_p2), %s1221_s22, 128  }
 0x8c4   : > { %1624 = vsyncadd (!%p1488_p2), %s1221_s22, 4294967168  ;;  %p23_p3 = scmp.ge.s32.totalorder %s1764_s14, 4   ;;  %s2182_s25 = smov %s1631_s26 }
 0x8c5   : > { %s2183_s26 = smov %s1635_s27  ;;  %s2184_s27 = smov %s1775_s17 }
 0x8c6   : > { %s2185_s28 = smov %s1764_s14  ;;  %25 = sbr.rel (!%p23_p3) target bundleno = 7 (0x7), region = 107 }
 0x8cd   :  { %1226 = vsyncpa [#allocation3], 1 }
 0x8ce   :  { %1228 = vsyncpa [#allocation3 + $0x1], 1 }

</bundles_post_ra>
